<compile_context>
chip_gen: v7x
topology: tpu7x:2x2x1
jax: 0.10.0
libtpu: 0.0.40
codegen_flags: <defaults>
</compile_context>

<pallas_src>
import functools

import jax
import jax.numpy as jnp
from jax.experimental import pallas as pl
from jax.experimental.pallas import tpu as pltpu


def _round_up(x, m):
    return ((x + m - 1) // m) * m


def _tensorcores_per_chip():
    """Heuristic: 2 TensorCores on v7x / v5p / v4 (megacore), else 1."""
    try:
        kind = jax.devices()[0].device_kind.lower()
    except Exception:
        return 1
    return 2 if any(t in kind for t in ("v7", "v5p", "v4")) else 1


def _choose_block_b(B, cap, min_steps):
    """Batch tile. Tiled blocks are multiples of 128 so the lane-dense output
    block satisfies the (8,128) divisibility rule on multi-step grids."""
    if B <= cap and min_steps <= 1:
        return B
    steps = max(min_steps, pl.cdiv(B, cap))
    blk = _round_up(pl.cdiv(B, steps), 128)
    if blk >= B:
        return B
    return blk


# ----------------------------------------------------------------------------
# Parameter fusion + packing (done once in the wrapper; jit constants).
# ----------------------------------------------------------------------------
def _fuse_and_pack(q1_params, q2_params):
    """Fuse the two heads and pack everything into one (rows, width) buffer.

    Returns (packed, hidden_layout, last_layout) where
      hidden_layout = ((w_off, d_in, d_out, b_off), ...)   # fused hidden layers
      last_layout   = (wT_off, d_in_last, bT_off)          # transposed last layer
    Row offsets are 8-aligned; width is a multiple of 128; pad rows are zero.
    """
    L = len(q1_params)
    assert L == len(q2_params) and L >= 1
    dtype = q1_params[0][0].dtype

    # --- fuse hidden layers -------------------------------------------------
    hidden = []
    for li in range(L - 1):
        w1, b1 = q1_params[li]
        w2, b2 = q2_params[li]
        if li == 0:
            w = jnp.concatenate([w1, w2], axis=1)                    # (D, 2H0)
        else:
            z = jnp.zeros_like(w1)
            w = jnp.concatenate(                                      # block-diag
                [jnp.concatenate([w1, z], axis=1),
                 jnp.concatenate([z, w2], axis=1)], axis=0)           # (2Hi-1, 2Hi)
        b = jnp.concatenate([b1.reshape(1, -1), b2.reshape(1, -1)], axis=1)
        hidden.append((w, b))

    # --- fuse last layer, stored transposed: row 0 = q1, row 1 = q2 ----------
    w1, b1 = q1_params[-1]
    w2, b2 = q2_params[-1]
    h_last = w1.shape[0]
    if L == 1:
        din_last = h_last                                   # both heads read obs
        wT = jnp.concatenate([w1.reshape(1, -1), w2.reshape(1, -1)], axis=0)
    else:
        din_last = 2 * h_last                               # [q1 feats | q2 feats]
        wT = jnp.zeros((2, din_last), dtype)
        wT = wT.at[0, :h_last].set(w1[:, 0])
        wT = wT.at[1, h_last:].set(w2[:, 0])
    bT = jnp.concatenate([jnp.reshape(b1, (1, 1)), jnp.reshape(b2, (1, 1))],
                         axis=0)                            # (2, 1)

    # --- pack into one lane-padded buffer ------------------------------------
    width = _round_up(max([w.shape[1] for (w, _) in hidden] + [din_last]), 128)

    pieces = []
    row = 0

    def _add(arr):
        nonlocal row
        rpad = _round_up(arr.shape[0], 8)
        buf = jnp.zeros((rpad, width), dtype)
        buf = buf.at[:arr.shape[0], :arr.shape[1]].set(arr.astype(dtype))
        pieces.append(buf)
        off = row
        row += rpad
        return off

    hidden_layout = []
    for (w, b) in hidden:
        w_off = _add(w)
        b_off = _add(b)
        hidden_layout.append((w_off, int(w.shape[0]), int(w.shape[1]), b_off))
    wT_off = _add(wT)        # padded to 8 rows; rows 2..7 are zero
    bT_off = _add(bT)

    packed = jnp.concatenate(pieces, axis=0)
    return packed, tuple(hidden_layout), (wT_off, int(din_last), bT_off)


# ----------------------------------------------------------------------------
# Kernel
# ----------------------------------------------------------------------------
def _double_q_kernel(obs_ref, pk_ref, out_ref, *, hidden_layout, last_layout,
                     use_tanh, gamma, both):
    """Fused two-head MLP critic on one batch tile (lane-dense output)."""
    h = obs_ref[...].astype(jnp.float32)                    # (block_b, D)

    # Fused hidden layers: standard (B, din) @ (din, dout) MXU matmuls.
    for (w_off, din, dout, b_off) in hidden_layout:
        w = pk_ref[w_off:w_off + din, 0:dout].astype(jnp.float32)
        b = pk_ref[b_off:b_off + 1, 0:dout].astype(jnp.float32)
        h = jnp.dot(h, w, preferred_element_type=jnp.float32)
        h = jnp.maximum(h + b, 0.0)

    # Last layer, transposed (NT matmul): result has batch on the lane axis.
    wT_off, din_last, bT_off = last_layout
    wT = pk_ref[wT_off:wT_off + 8, 0:din_last].astype(jnp.float32)  # rows 2..7 zero
    q8 = jax.lax.dot_general(wT, h, (((1,), (1,)), ((), ())),
                             preferred_element_type=jnp.float32)    # (8, block_b)
    bT = pk_ref[bT_off:bT_off + 2, 0:1].astype(jnp.float32)         # (2, 1)
    q = q8[0:2, :] + bT                                             # (2, block_b)

    if use_tanh:
        q = jnp.tanh(q) * (1.0 / (1.0 - gamma))

    if both:
        out_ref[...] = q.astype(out_ref.dtype)                      # (2, block_b)
    else:
        out_ref[...] = jnp.minimum(q[0:1, :], q[1:2, :]).astype(out_ref.dtype)


# ----------------------------------------------------------------------------
# Wrapper
# ----------------------------------------------------------------------------
def init_double_q_params(key, obs_dim, list_hidden_dims, dtype=jnp.float32):
    """Build [Q1_layers, Q2_layers]; each layer is (W[in,out], b[1,out])."""
    dims = [obs_dim] + list(list_hidden_dims) + [1]
    heads = []
    for _ in range(2):
        layers = []
        for i in range(len(dims) - 1):
            key, wk, bk = jax.random.split(key, 3)
            w = (jax.random.normal(wk, (dims[i], dims[i + 1]), dtype)
                 * (dims[i] ** -0.5))
            b = 0.1 * jax.random.normal(bk, (1, dims[i + 1]), dtype)
            layers.append((w, b))
        heads.append(layers)
    return heads  # [q1_params, q2_params]


def double_q_critic_state_forward(obs, action, q1_params, q2_params, *,
                                  gamma=0.99, use_tanh=False, both=False,
                                  block_b_cap=2048, min_grid_steps=None):
    """Pallas forward of DoubleQCriticState. Returns (B,1) or ((B,1),(B,1))."""
    assert obs.shape[0] == action.shape[0]  # action unused (state-only critic)
    B, D = obs.shape

    if min_grid_steps is None:
        min_grid_steps = _tensorcores_per_chip()   # use both TCs on v7x-like chips

    packed, hidden_layout, last_layout = _fuse_and_pack(q1_params, q2_params)

    block_b = _choose_block_b(B, block_b_cap, min_grid_steps)
    n_out = 2 if both else 1
    grid = (pl.cdiv(B, block_b),)

    in_specs = [
        pl.BlockSpec((block_b, D), lambda i: (i, 0)),
        # Whole packed param stack, constant index -> resident in VMEM.
        pl.BlockSpec(packed.shape, lambda i: (0, 0)),
    ]
    # Lane-dense output: batch on the lane axis.
    out_specs = pl.BlockSpec((n_out, block_b), lambda i: (0, i))
    out_shape = jax.ShapeDtypeStruct((n_out, B), obs.dtype)

    # Advisory cost estimate for the XLA scheduler.
    flops = 2 * B * (sum(din * dout for (_, din, dout, _) in hidden_layout)
                     + 2 * last_layout[1])
    bytes_accessed = (obs.size * obs.dtype.itemsize
                      + packed.size * packed.dtype.itemsize
                      + n_out * B * obs.dtype.itemsize)
    transcendentals = 2 * B if use_tanh else 0

    kernel = functools.partial(
        _double_q_kernel, hidden_layout=hidden_layout, last_layout=last_layout,
        use_tanh=use_tanh, gamma=float(gamma), both=both)

    out = pl.pallas_call(
        kernel,
        out_shape=out_shape,
        grid_spec=pltpu.PrefetchScalarGridSpec(
            num_scalar_prefetch=0,
            grid=grid,
            in_specs=in_specs,
            out_specs=out_specs,
        ),
        compiler_params=pltpu.CompilerParams(
            dimension_semantics=("parallel",),
        ),
        cost_estimate=pl.CostEstimate(flops=flops,
                                      transcendentals=transcendentals,
                                      bytes_accessed=bytes_accessed),
    )(obs, packed)

    if both:
        return out[0].reshape(B, 1), out[1].reshape(B, 1)
    return out.reshape(B, 1)


# ----------------------------------------------------------------------------
# Self-test
# ----------------------------------------------------------------------------
if __name__ == "__main__":
    key = jax.random.PRNGKey(0)
    B, obs_dim, action_dim = 8, 32, 4
    hidden = (64, 64)
    gamma = 0.99

    key, ko, ka, kp = jax.random.split(key, 4)
    obs = jax.random.normal(ko, (B, obs_dim), dtype=jnp.float32)
    action = jax.random.normal(ka, (B, action_dim), dtype=jnp.float32)
    q1_params, q2_params = init_double_q_params(kp, obs_dim, hidden)

    q_min = double_q_critic_state_forward(obs, action, q1_params, q2_params,
                                          gamma=gamma)
    q1, q2 = double_q_critic_state_forward(obs, action, q1_params, q2_params,
                                           gamma=gamma, both=True)
    q_tanh = double_q_critic_state_forward(obs, action, q1_params, q2_params,
                                           gamma=gamma, use_tanh=True)

    # Ragged multi-tile batch (forces grid > 1 and a partial last tile).
    B2 = 300
    key, ko2, ka2 = jax.random.split(key, 3)
    obs2 = jax.random.normal(ko2, (B2, obs_dim), dtype=jnp.float32)
    action2 = jax.random.normal(ka2, (B2, action_dim), dtype=jnp.float32)
    q_min2 = double_q_critic_state_forward(obs2, action2, q1_params, q2_params,
                                           gamma=gamma, block_b_cap=128)

    jax.block_until_ready((q_min, q1, q2, q_tanh, q_min2))

    # Pure-JAX reference (unfused).
    def ref_head(x, layers):
        h = x
        for li, (w, b) in enumerate(layers):
            h = h @ w + b
            if li < len(layers) - 1:
                h = jnp.maximum(h, 0.0)
        return h

    r1 = ref_head(obs, q1_params)
    r2 = ref_head(obs, q2_params)
    ref_min = jnp.minimum(r1, r2)
    ref_tanh = jnp.minimum(jnp.tanh(r1), jnp.tanh(r2)) / (1.0 - gamma)
    ref_min2 = jnp.minimum(ref_head(obs2, q1_params), ref_head(obs2, q2_params))

    assert q_min.shape == (B, 1) and q_min.dtype == obs.dtype
    assert bool(jnp.allclose(q_min, ref_min, atol=1e-5, rtol=1e-5))
    assert bool(jnp.allclose(q1, r1, atol=1e-5, rtol=1e-5))
    assert bool(jnp.allclose(q2, r2, atol=1e-5, rtol=1e-5))
    assert bool(jnp.allclose(q_tanh, ref_tanh, atol=1e-4, rtol=1e-5))
    assert q_min2.shape == (B2, 1)
    assert bool(jnp.allclose(q_min2, ref_min2, atol=1e-5, rtol=1e-5))
    print("KERNEL_OK")
</pallas_src>

<mosaic_0001>
module attributes {stable_mosaic.version = 11 : i64} {
  func.func @_double_q_kernel(%arg0: i32, %arg1: memref<8x32xf32, #tpu.memory_space<vmem>>, %arg2: memref<192x128xf32, #tpu.memory_space<vmem>>, %arg3: memref<1x8xf32, #tpu.memory_space<vmem>>) attributes {dimension_semantics = [#tpu.dimension_semantics<parallel>], iteration_bounds = array<i64: 1>, scalar_prefetch = 0 : i64, scratch_operands = 0 : i64, tpu.core_type = #tpu.core_type<tc>, window_params = [{transform_indices = @transform_0, window_bounds = array<i64: 8, 32>}, {pipeline_mode = #tpu.pipeline_mode<synchronous>, transform_indices = @transform_1, window_bounds = array<i64: 192, 128>}, {transform_indices = @transform_2, window_bounds = array<i64: 1, 8>}]} {
    %c0 = arith.constant 0 : index
    %c0_0 = arith.constant 0 : index
    %0 = vector.load %arg1[%c0, %c0_0] : memref<8x32xf32, #tpu.memory_space<vmem>>, vector<8x32xf32>
    %c0_1 = arith.constant 0 : index
    %c0_2 = arith.constant 0 : index
    %1 = vector.load %arg2[%c0_1, %c0_2] : memref<192x128xf32, #tpu.memory_space<vmem>>, vector<32x128xf32>
    %c32 = arith.constant 32 : index
    %c0_3 = arith.constant 0 : index
    %2 = vector.load %arg2[%c32, %c0_3] : memref<192x128xf32, #tpu.memory_space<vmem>>, vector<1x128xf32>
    %cst = arith.constant dense<0.000000e+00> : vector<8x128xf32>
    %3 = tpu.matmul %0, %1, %cst {dimension_numbers = #tpu.dot_dimension_numbers<[1], [0], [0], [1], [0, 0, 1, 1], [], []>} : vector<8x32xf32>, vector<32x128xf32>, vector<8x128xf32> -> vector<8x128xf32>
    %4 = vector.broadcast %2 : vector<1x128xf32> to vector<8x128xf32>
    %5 = arith.addf %3, %4 : vector<8x128xf32>
    %cst_4 = arith.constant 0.000000e+00 : f32
    %6 = vector.broadcast %cst_4 : f32 to vector<8x128xf32>
    %7 = arith.maximumf %5, %6 : vector<8x128xf32>
    %c40 = arith.constant 40 : index
    %c0_5 = arith.constant 0 : index
    %8 = vector.load %arg2[%c40, %c0_5] : memref<192x128xf32, #tpu.memory_space<vmem>>, vector<128x128xf32>
    %c168 = arith.constant 168 : index
    %c0_6 = arith.constant 0 : index
    %9 = vector.load %arg2[%c168, %c0_6] : memref<192x128xf32, #tpu.memory_space<vmem>>, vector<1x128xf32>
    %cst_7 = arith.constant dense<0.000000e+00> : vector<8x128xf32>
    %10 = tpu.matmul %7, %8, %cst_7 {dimension_numbers = #tpu.dot_dimension_numbers<[1], [0], [0], [1], [0, 0, 1, 1], [], []>} : vector<8x128xf32>, vector<128x128xf32>, vector<8x128xf32> -> vector<8x128xf32>
    %11 = vector.broadcast %9 : vector<1x128xf32> to vector<8x128xf32>
    %12 = arith.addf %10, %11 : vector<8x128xf32>
    %cst_8 = arith.constant 0.000000e+00 : f32
    %13 = vector.broadcast %cst_8 : f32 to vector<8x128xf32>
    %14 = arith.maximumf %12, %13 : vector<8x128xf32>
    %c176 = arith.constant 176 : index
    %c0_9 = arith.constant 0 : index
    %15 = vector.load %arg2[%c176, %c0_9] : memref<192x128xf32, #tpu.memory_space<vmem>>, vector<8x128xf32>
    %cst_10 = arith.constant dense<0.000000e+00> : vector<8x8xf32>
    %16 = tpu.matmul %15, %14, %cst_10 {dimension_numbers = #tpu.dot_dimension_numbers<[1], [1], [0], [0], [0, 0, 1, 0], [], []>} : vector<8x128xf32>, vector<8x128xf32>, vector<8x8xf32> -> vector<8x8xf32>
    %c184 = arith.constant 184 : index
    %c0_11 = arith.constant 0 : index
    %17 = vector.load %arg2[%c184, %c0_11] : memref<192x128xf32, #tpu.memory_space<vmem>>, vector<2x1xf32>
    %18 = vector.extract_strided_slice %16 {offsets = [0, 0], sizes = [2, 8], strides = [1, 1]} : vector<8x8xf32> to vector<2x8xf32>
    %19 = vector.broadcast %17 : vector<2x1xf32> to vector<2x8xf32>
    %20 = arith.addf %18, %19 : vector<2x8xf32>
    %21 = vector.extract_strided_slice %20 {offsets = [0, 0], sizes = [1, 8], strides = [1, 1]} : vector<2x8xf32> to vector<1x8xf32>
    %22 = vector.extract_strided_slice %20 {offsets = [1, 0], sizes = [1, 8], strides = [1, 1]} : vector<2x8xf32> to vector<1x8xf32>
    %23 = arith.minimumf %21, %22 : vector<1x8xf32>
    %c0_12 = arith.constant 0 : index
    %c0_13 = arith.constant 0 : index
    %24 = vector.load %arg3[%c0_12, %c0_13] : memref<1x8xf32, #tpu.memory_space<vmem>>, vector<1x8xf32>
    tpu.vector_store %arg3[%c0_12, %c0_13], %23 {strides = array<i32>} : memref<1x8xf32, #tpu.memory_space<vmem>>, vector<1x8xf32>,
    return
  }
  func.func @transform_0(%arg0: i32) -> (i32, i32) {
    %c0_i32 = arith.constant 0 : i32
    %c0_i32_0 = arith.constant 0 : i32
    return %arg0, %c0_i32 : i32, i32
  }
  func.func @transform_1(%arg0: i32) -> (i32, i32) {
    %c0_i32 = arith.constant 0 : i32
    %c0_i32_0 = arith.constant 0 : i32
    %c0_i32_1 = arith.constant 0 : i32
    return %c0_i32, %c0_i32_0 : i32, i32
  }
  func.func @transform_2(%arg0: i32) -> (i32, i32) {
    %c0_i32 = arith.constant 0 : i32
    %c0_i32_0 = arith.constant 0 : i32
    return %c0_i32, %arg0 : i32, i32
  }
}

</mosaic_0001>

<bundles_post_ra>
// kernel: tpu_custom_call.1
= control target key start
LH: loop header
LB: loop body
LE: loop exit
PB: predicated region body
PF: predicated region fallthrough
CT: control target
= control target key end

     0   :  { %7 = vsyncpa [#allocation3], 0  ;;  %s575_s0 = inlined_call_operand.hbm [shape: f32[8,32], index: 0, kind: input, shape index: {}]   ;;  %s576_s1 = inlined_call_operand.hbm [shape: f32[192,128], index: 1, kind: input, shape index: {}]   ;;  %s577_s2 = inlined_call_operand.hbm [shape: f32[1,8], index: 2, kind: output, shape index: {}]  }
   0x1   :  { %8 = vsyncpa [#allocation6], 0 }
   0x2   :  { %9 = vsyncpa [#allocation4], 0  ;;  %s505_s9 = smov [#allocation2]   ;;  %s506_s11 = smov [#allocation5]  }
   0x3   :  { %s16_s10 = sshll.u32 %s505_s9, 4  ;;  %s25_s12 = sshll.u32 %s506_s11, 4  ;;  %s17_s10 = int_to_ptr.vmem [resolvable:$true] %s16_s10  ;;  %s529_s12 = int_to_ptr.vmem [resolvable:$true] %s25_s12 }
   0x4   :  { %s433_s15 = scalar_lea.hbm %s575_s0, 128 }
   0x5   :  { %p434_p0 = scmp.ne.s32.totalorder %s575_s0, %s433_s15  ;;  %p437_p1 = scmp.lt.u32.totalorder %s433_s15, %s575_s0 }
   0x7   :  { %p439_p2 = pnand %p437_p1, %p434_p0 }
   0x9   :  { %442 = shalt.err (!%p439_p2)
}
   0xa   :  { %s443_s20 = scalar_lea.vmem %s17_s10, 128  ;;  %p448_p4 = scmp.lt.s32.totalorder %s17_s10, %s17_s10 }
   0xb   :  { %p444_p3 = scmp.ne.s32.totalorder %s17_s10, %s443_s20  ;;  %p449_p5 = scmp.lt.s32.totalorder %s443_s20, %s443_s20 }
   0xd   :  { %p450_p6 = por %p449_p5, %p448_p4 }
   0xf   :  { %p451_p7 = pnand %p450_p6, %p444_p3 }
  0x11   :  { %454 = shalt.err (!%p451_p7)
}
  0x12   :  { %19 = dma.hbm_to_vmem [thread:$0]  %s575_s0, 128, %s17_s10, [#allocation3]  }
  0x13   :  { %s455_s25 = scalar_lea.hbm %s576_s1, 3072 }
  0x14   :  { %p456_p8 = scmp.ne.s32.totalorder %s576_s1, %s455_s25  ;;  %p459_p9 = scmp.lt.u32.totalorder %s455_s25, %s576_s1 }
  0x16   :  { %p461_p10 = pnand %p459_p9, %p456_p8 }
  0x18   :  { %464 = shalt.err (!%p461_p10)
}
  0x19   :  { %s465_s30 = scalar_lea.vmem %s529_s12, 3072  ;;  %p470_p12 = scmp.lt.s32.totalorder %s529_s12, %s529_s12 }
  0x1a   :  { %p466_p11 = scmp.ne.s32.totalorder %s529_s12, %s465_s30  ;;  %p471_p13 = scmp.lt.s32.totalorder %s465_s30, %s465_s30 }
  0x1c   :  { %p472_p0 = por %p471_p13, %p470_p12 }
  0x1e   :  { %p473_p1 = pnand %p472_p0, %p466_p11 }
  0x20   :  { %476 = shalt.err (!%p473_p1)
}
  0x21   :  { %s507_s0 = smov 128   ;;  %s508_s3 = smov 8  }
  0x22   :  { %31 = dma.hbm_to_vmem [thread:$0]  %s576_s1, 3072, %s529_s12, [#allocation6], %s507_s0, %s507_s0, %s508_s3  }
  0x23   :  { %499 = dma.done.wait [#allocation3], 128  }
  0x24   :  { %500 = vsyncadd [#allocation3], 4294967168 }
  0x25   :  { %501 = dma.done.wait [#allocation6], 3072  }
  0x26   :  { %502 = vsyncadd [#allocation6], 4294964224  ;;  %v509_v0 = vmov 0.0|0.0   ;;  %vm510_vm0 = vmmov 0   ;;  %v511_v1 = vmov 0.0   ;;  %v39_v2 = vld [vmem:[#allocation5] sm:$0xff] }
  0x27   :  { %393 = vmatprep.subr.bf16.mxu0 %v509_v0  ;;  %350 = vmatprep.mubr.msk.f32.mxu0 %vm510_vm0, %v511_v1  ;;  %v40_v3 = vld [vmem:[#allocation5 + $0x8] sm:$0xff]  ;;  %v41_v4 = vld [vmem:[#allocation5 + $0x10] sm:$0xff]  ;;  %v42_v6 = vld [vmem:[#allocation5 + $0x18] sm:$0xff]  ;;  %vm48_vm1 = vcmask 261120   ;;  %v512_v39 = vmov 0   ;;  %s513_s1 = smov [#allocation7]  }
  0x28   :  { %399 = vmatprep.subr.bf16.mxu1 %v509_v0  ;;  %385 = vmatprep.mubr.msk.f32.mxu1 %vm510_vm0, %v511_v1  ;;  %v394_v5 = vpack.c.bf16 %v40_v3, %v39_v2  ;;  %v123_v7 = vld [vmem:[#allocation5 + $0x28] sm:$0xff]  ;;  %v124_v8 = vld [vmem:[#allocation5 + $0x30] sm:$0xff]  ;;  %v125_v9 = vld [vmem:[#allocation5 + $0x38] sm:$0xff]  ;;  %v397_v11 = vpack.c.bf16 %v42_v6, %v41_v4  ;;  %s305_s6 = sshll.u32 %s513_s1, 4  ;;  %vm297_vm2 = vcmask 57344   ;;  %s306_s6 = int_to_ptr.vmem [resolvable:$true] %s305_s6 }
  0x29   :  { %v126_v10 = vld [vmem:[#allocation5 + $0x40] sm:$0xff]  ;;  %v400_v12 = vpack.c.bf16 %v124_v8, %v123_v7  ;;  %v127_v14 = vld [vmem:[#allocation5 + $0x48] sm:$0xff]  ;;  %v128_v15 = vld [vmem:[#allocation5 + $0x50] sm:$0xff]  ;;  %432 = vset.pattern.permute.xlu0 %v512_v39  ;;  %s477_s7 = scalar_lea.vmem %s306_s6, 16  ;;  %s481_s8 = scalar_lea.vmem %s306_s6, 32 }
  0x2a   :  { %395 = vmatpush3.bf16.msra.mxu0 %v394_v5  ;;  %v403_v13 = vpack.c.bf16 %v126_v10, %v125_v9  ;;  %v38_v16 = vld [vmem:[#allocation2] sm:$0xff]  ;;  %v406_v17 = vpack.c.bf16 %v128_v15, %v127_v14  ;;  %v130_v19 = vld [vmem:[#allocation5 + $0x60] sm:$0xff]  ;;  %v131_v21 = vld [vmem:[#allocation5 + $0x68] sm:$0xff]  ;;  %p478_p2 = scmp.ne.s32.totalorder %s306_s6, %s477_s7  ;;  %p482_p3 = scmp.lt.s32.totalorder %s306_s6, %s306_s6 }
  0x2b   :  { %396 = vmatprep.subr.bf16.mxu0 %v509_v0  ;;  %401 = vmatpush3.bf16.msra.mxu1 %v400_v12  ;;  %v129_v18 = vld [vmem:[#allocation5 + $0x58] sm:$0xff]  ;;  %v132_v22 = vld [vmem:[#allocation5 + $0x70] sm:$0xff]  ;;  %v134_v25 = vld [vmem:[#allocation5 + $0x80] sm:$0xff]  ;;  %p483_p4 = scmp.lt.s32.totalorder %s481_s8, %s477_s7 }
  0x2c   :  { %402 = vmatprep.subr.bf16.mxu1 %v509_v0  ;;  %v409_v20 = vpack.c.bf16 %v130_v19, %v129_v18  ;;  %v412_v23 = vpack.c.bf16 %v132_v22, %v131_v21  ;;  %v133_v24 = vld [vmem:[#allocation5 + $0x78] sm:$0xff]  ;;  %v135_v27 = vld [vmem:[#allocation5 + $0x88] sm:$0xff]  ;;  %v136_v28 = vld [vmem:[#allocation5 + $0x90] sm:$0xff] }
  0x2d   :  { %v415_v26 = vpack.c.bf16 %v134_v25, %v133_v24  ;;  %v418_v29 = vpack.c.bf16 %v136_v28, %v135_v27  ;;  %v137_v30 = vld [vmem:[#allocation5 + $0x98] sm:$0xff]  ;;  %v138_v31 = vld [vmem:[#allocation5 + $0xa0] sm:$0xff]  ;;  %v317_v40 = vld [vmem:[#allocation5 + $0xa8] ss:$0 sm:$0xff]  ;;  %p484_p5 = por %p483_p4, %p482_p3 }
  0x2e   :  { %398 = vmatpush3.bf16.msra.mxu0 %v397_v11  ;;  %v421_v32 = vpack.c.bf16 %v138_v31, %v137_v30  ;;  %v315_v33 = vld [vmem:[#allocation5 + $0x20] ss:$0 sm:$0xff]  ;;  %v286_v38 = vld [vmem:[#allocation5 + $0xb8] sm:$0x3]  ;;  %v215_v45 = vld [vmem:[#allocation5 + $0xb0] sm:$0xff] }
  0x2f   :  { %388 = vmatprep.subr.mxu0 %v511_v1  ;;  %404 = vmatpush3.bf16.msra.mxu1 %v403_v13  ;;  %p485_p6 = pnand %p484_p5, %p478_p2 }
  0x30   :  { %405 = vmatprep.subr.bf16.mxu1 %v509_v0  ;;  %289 = vperm.xlu0 %432, %v286_v38  }
  0x31   :  { %351 = vmatmul.mubr.msk.f32.vlgmr.msra.gmra.mrb[0].mxu0 %vm48_vm1, %v38_v16 }
  0x32   :  { %390 = vmatprep.mubr.msk.f32.mxu0 %vm510_vm0, %v511_v1 }
  0x33   :  { %407 = vmatpush3.bf16.msra.mxu1 %v406_v17 }
  0x34   :  { %408 = vmatprep.subr.bf16.mxu1 %v509_v0 }
  0x37   :  { %410 = vmatpush3.bf16.msra.mxu1 %v409_v20 }
  0x38   :  { %411 = vmatprep.subr.bf16.mxu1 %v509_v0 }
  0x3b   :  { %413 = vmatpush3.bf16.msra.mxu1 %v412_v23 }
  0x3c   :  { %414 = vmatprep.subr.bf16.mxu1 %v509_v0 }
  0x3f   :  { %416 = vmatpush3.bf16.msra.mxu1 %v415_v26 }
  0x40   :  { %417 = vmatprep.subr.bf16.mxu1 %v509_v0 }
  0x43   :  { %419 = vmatpush3.bf16.msra.mxu1 %v418_v29 }
  0x44   :  { %420 = vmatprep.subr.bf16.mxu1 %v509_v0 }
  0x47   :  { %422 = vmatpush3.bf16.msra.mxu1 %v421_v32 }
  0xaf   :  { %v290_v46 = vpop.permute.xlu0 %289 }
 0x104   :  { %v118_v34 = vpop.f32.mrb[0].mxu0 }
 0x105   :  { %v119_v35 = vadd.f32 %v315_v33, %v118_v34  ;;  %v352_v36 = vpop.f32.mrb[1].mxu0 }
 0x107   :  { %v122_v37 = vmax.f32 %v119_v35, 0.0 }
 0x109   :  { %386 = vmatmul.mubr.f32.vlgmr.msra.gmra.mrb[0].mxu1 %v122_v37 }
 0x1dc   :  { %v210_v41 = vpop.f32.mrb[0].mxu1 }
 0x1dd   :  { %v211_v42 = vadd.f32 %v317_v40, %v210_v41  ;;  %v387_v43 = vpop.f32.mrb[1].mxu1 }
 0x1df   :  { %v214_v44 = vmax.f32 %v211_v42, 0.0 }
 0x1e1   :  { %389 = vmatpush3.xpose.msra.mxu0 %v214_v44 }
 0x1e4   :  { %391 = vmatmul.mubr.f32.vlgmr.msra.gmra.mrb[2].mxu0 %v215_v45 }
 0x2b7   :  { %v282_v47 = vpop.f32.mrb[2].mxu0 }
 0x2b8   :  { %v292_v48 = vadd.f32 %v290_v46, %v282_v47  ;;  %v392_v49 = vpop.f32.mrb[3].mxu0 }
 0x2ba   :  { %v294_v50 = vrot.slane %v292_v48, 1 }
 0x2bc   :  { %v296_v51 = vmin.f32 %v292_v48, %v294_v50 }
 0x2be   :  { %298 = vst.msk [vmem:[#allocation7] sm:$0x1] %vm297_vm2, %v296_v51 }
 0x2bf   :  { %488 = shalt.err (!%p485_p6)
}
 0x2c0   :  { %s489_s11 = scalar_lea.hbm %s577_s2, 16 }
 0x2c1   :  { %p490_p7 = scmp.ne.s32.totalorder %s577_s2, %s489_s11  ;;  %p493_p8 = scmp.lt.u32.totalorder %s489_s11, %s577_s2 }
 0x2c3   :  { %p495_p9 = pnand %p493_p8, %p490_p7 }
 0x2c5   :  { %498 = shalt.err (!%p495_p9)
}
 0x2c6   :  { %308 = dma.vmem_to_hbm [thread:$0]  %s306_s6, 16, %s577_s2, [#allocation4]  }
 0x2c7   :  { %503 = dma.done.wait [#allocation4], 16  }
 0x2c8   :  { %504 = vsyncadd [#allocation4], 4294967280 }
 0x2c9   :  { %312 = vsyncpa [#allocation3], 1 }
 0x2ca   :  { %313 = vsyncpa [#allocation6], 1 }
 0x2cb   :  { %314 = vsyncpa [#allocation4], 1 }

</bundles_post_ra>
